<compile_context>
chip_gen: v5e
topology: v5e:2x2
jax: 0.10.0
libtpu: 0.0.40
codegen_flags: <defaults>
</compile_context>

<pallas_src>
import numpy as np
import jax
import jax.numpy as jnp
from jax import lax
from jax.experimental import pallas as pl
from jax.experimental.pallas import tpu as pltpu


def _round_up(x, m):
    return ((x + m - 1) // m) * m


# ----------------------------------------------------------------------------
# Kernel 1: row-shifted streaming copy, out = x[1:, :]
#   Grid over output row tiles; input is a raw HBM ref; each step DMAs rows
#   [i*tm + 1, i*tm + 1 + tm) straight into the pipelined output block.
#   The last (partial) tile issues an exact-size DMA of `rem` rows into
#   o_ref[:rem] - no clamped read, no overlapping VMEM realign.
# ----------------------------------------------------------------------------
def drop_first_row(x, *, tm_target=4096, tile_bytes_target=8 << 20):
    n_in, d = x.shape
    n_out = n_in - 1
    if n_out <= 0:
        return x[1:, :]

    itemsize = jnp.dtype(x.dtype).itemsize
    d_pad = _round_up(d, 128)                     # lane-padded row in VMEM
    row_bytes = d_pad * itemsize

    if n_out < 8:
        tm = n_out                                # block == full dim
    else:
        budget_rows = max(8, (tile_bytes_target // row_bytes) // 8 * 8)
        tm = min(tm_target, budget_rows, (n_out // 8) * 8)

    n_tiles = pl.cdiv(n_out, tm)
    rem = n_out % tm                              # static

    def kernel(x_hbm, o_ref, sem):
        i = pl.program_id(0)
        base = i * tm + 1                         # skip padding row 0
        if rem == 0:
            cp = pltpu.make_async_copy(x_hbm.at[pl.ds(base, tm), :], o_ref, sem)
            cp.start()
            cp.wait()
        else:
            @pl.when(i < n_tiles - 1)
            def _():
                cp = pltpu.make_async_copy(x_hbm.at[pl.ds(base, tm), :],
                                           o_ref, sem)
                cp.start()
                cp.wait()

            @pl.when(i == n_tiles - 1)
            def _():
                # exact-size copy of the remaining rows; the out-of-bounds
                # part of the last output block is never written back.
                cp = pltpu.make_async_copy(x_hbm.at[pl.ds(base, rem), :],
                                           o_ref.at[pl.ds(0, rem), :], sem)
                cp.start()
                cp.wait()

    return pl.pallas_call(
        kernel,
        out_shape=jax.ShapeDtypeStruct((n_out, d), x.dtype),
        grid=(n_tiles,),
        in_specs=[pl.BlockSpec(memory_space=pl.ANY)],          # raw HBM ref
        out_specs=pl.BlockSpec((tm, d), lambda i: (i, 0)),
        scratch_shapes=[pltpu.SemaphoreType.DMA(())],
        compiler_params=pltpu.CompilerParams(
            dimension_semantics=("parallel",),
            vmem_limit_bytes=32 << 20),
    )(x)


# ----------------------------------------------------------------------------
# edge_index as a lane-dense (2, nb) int32 array.
#   row 0: src[k] = b2a[1 + k] - 1
#   row 1: dst[k] = b2a[b2revb[1 + k]] - 1
# Per the perf review this is a tiny O(nb) int32 gather, so it is computed in
# plain JAX/XLA instead of an O(nb * nb1) compare/select Pallas reduction.
# Chemprop b_scopes are contiguous, start at 1 and cover every real bond with
# b2a[0] == 0 padding, so the reference per-molecule loop collapses to this
# global formulation.
# ----------------------------------------------------------------------------
def build_edge_index(b2a, b2revb):
    b2a = jnp.asarray(b2a, jnp.int32).reshape(-1)
    b2revb = jnp.asarray(b2revb, jnp.int32).reshape(-1)
    nb = b2a.shape[0] - 1
    if nb <= 0:
        return jnp.zeros((2, 0), jnp.int32)
    src = b2a[1:] - 1
    dst = b2a[b2revb[1:]] - 1
    return jnp.stack([src, dst], axis=0)          # (2, nb) torch layout


# ----------------------------------------------------------------------------
# Kernel 2: batch vector (repeat_interleave of molecule sizes), lane-dense.
#   batch[j] = #{ i in 1..M : j >= ptr[i] }
# Grid over atom tiles; molecule thresholds are a tiny (Mp, 1) column kept
# resident.  The (Mp, TA) comparison is accumulated in 8-sublane chunks so the
# live intermediate stays at a handful of vregs even for large M.
# ----------------------------------------------------------------------------
def _batch_kernel(thr_ref, o_ref):
    t = pl.program_id(0)
    ta = o_ref.shape[1]
    mp = thr_ref.shape[0]                          # multiple of 8 (static)
    n_chunks = mp // 8
    atom_idx = lax.broadcasted_iota(jnp.int32, (1, ta), 1) + t * ta

    def chunk_sum(c, acc):
        start = pl.multiple_of(c * 8, 8)
        thr = thr_ref[pl.ds(start, 8), :]          # (8, 1)
        hit = (atom_idx >= thr).astype(jnp.int32)  # (8, ta) only, per chunk
        return acc + jnp.sum(hit, axis=0, keepdims=True)

    acc0 = jnp.zeros((1, ta), jnp.int32)
    if n_chunks <= 8:                              # short: static unroll
        acc = acc0
        for c in range(n_chunks):
            acc = chunk_sum(c, acc)
        o_ref[...] = acc
    else:
        o_ref[...] = lax.fori_loop(0, n_chunks, chunk_sum, acc0)


def build_batch(ptr, n_atoms):
    if n_atoms <= 0:
        return jnp.zeros((0,), jnp.int32)
    m = ptr.shape[0] - 1
    TA = 1024 if n_atoms >= 1024 else _round_up(n_atoms, 128)
    nap = _round_up(n_atoms, TA)
    mp = _round_up(max(m, 1), 8)
    # pad thresholds with a huge sentinel so padded rows never count
    thr_col = jnp.full((mp, 1), 2 ** 30, dtype=jnp.int32)
    thr_col = thr_col.at[:m, 0].set(ptr[1:].astype(jnp.int32))

    out = pl.pallas_call(
        _batch_kernel,
        out_shape=jax.ShapeDtypeStruct((1, nap), jnp.int32),
        grid=(nap // TA,),
        in_specs=[pl.BlockSpec((mp, 1), lambda t: (0, 0))],
        out_specs=pl.BlockSpec((1, TA), lambda t: (0, t)),
        compiler_params=pltpu.CompilerParams(
            dimension_semantics=("parallel",)),
    )(thr_col)
    return out[0, :n_atoms]


# ----------------------------------------------------------------------------
# Forward wrapper  (== mol_graph2data.forward)
# ----------------------------------------------------------------------------
def mol_graph2data_forward(f_atoms, f_bonds, a2b, b2a, b2revb, a_scope, b_scope):
    del a2b  # unpacked by the reference forward but never used
    # Host-side scope bookkeeping (a_scope is a Python list of (start, size)).
    repeats = [int(n) for (_, n) in a_scope]
    n_atoms = int(sum(repeats))

    # ptr: cumulative atom counts with a leading 0 (PyG `cumsum` convention).
    ptr = jnp.concatenate([jnp.zeros((1,), jnp.int32),
                           jnp.cumsum(jnp.asarray(repeats, jnp.int32))])

    batch = build_batch(ptr, n_atoms)

    atoms_out = drop_first_row(f_atoms)
    bonds_out = drop_first_row(f_bonds)

    edge_index = build_edge_index(b2a, b2revb)        # (2, nb)

    b2revb_individual = []                            # reference never fills it
    return atoms_out, edge_index, bonds_out, b2revb_individual, batch, ptr


# ----------------------------------------------------------------------------
# Demo / self-check
# ----------------------------------------------------------------------------
if __name__ == "__main__":
    key = jax.random.PRNGKey(0)
    k1, k2 = jax.random.split(key)

    # Synthetic BatchMolGraph: 2 molecules, 5 + 3 atoms, 8 + 4 directed bonds,
    # plus the chemprop padding slot at index 0 of every array.
    atom_fdim, bond_fdim = 32, 40
    n_atoms, n_bonds = 8, 12

    f_atoms = jax.random.normal(k1, (n_atoms + 1, atom_fdim), jnp.float32)
    f_bonds = jax.random.normal(k2, (n_bonds + 1, bond_fdim), jnp.float32)
    f_atoms = f_atoms.at[0].set(0.0)
    f_bonds = f_bonds.at[0].set(0.0)

    # molecule 0: chain 1-2-3-4-5 ; molecule 1: chain 6-7-8 (1-indexed atoms)
    b2a = np.array([0,
                    1, 2, 2, 3, 3, 4, 4, 5,          # mol 0 directed bonds
                    6, 7, 7, 8], dtype=np.int32)     # mol 1 directed bonds
    b2revb = np.array([0,
                       2, 1, 4, 3, 6, 5, 8, 7,
                       10, 9, 12, 11], dtype=np.int32)
    a2b = None                                        # unused by forward
    a_scope = [(1, 5), (6, 3)]
    b_scope = [(1, 8), (9, 4)]

    outs = mol_graph2data_forward(f_atoms, f_bonds, a2b, b2a, b2revb,
                                  a_scope, b_scope)
    atoms_out, edge_index, bonds_out, b2revb_ind, batch, ptr = outs
    jax.block_until_ready((atoms_out, edge_index, bonds_out, batch, ptr))

    # ---- reference (pure numpy, mirrors the PyTorch loop) ----
    exp_atoms = np.asarray(f_atoms)[1:, :]
    exp_bonds = np.asarray(f_bonds)[1:, :]
    ei0, ei1 = [], []
    for (a0, an), (b0, bn) in zip(a_scope, b_scope):
        b2a_i = b2a[b0:b0 + bn]
        b2revb_i = b2revb[b0:b0 + bn]
        ei0.extend(b2a_i.tolist())
        ei1.extend(b2a_i[b2revb_i - b0].tolist())
    exp_edge = np.stack([np.array(ei0), np.array(ei1)]) - 1
    exp_batch = np.concatenate([np.full((n,), i) for i, (_, n) in enumerate(a_scope)])
    exp_ptr = np.concatenate([[0], np.cumsum([n for (_, n) in a_scope])])

    np.testing.assert_allclose(np.asarray(atoms_out), exp_atoms, rtol=0, atol=0)
    np.testing.assert_allclose(np.asarray(bonds_out), exp_bonds, rtol=0, atol=0)
    np.testing.assert_array_equal(np.asarray(edge_index), exp_edge)
    np.testing.assert_array_equal(np.asarray(batch), exp_batch)
    np.testing.assert_array_equal(np.asarray(ptr), exp_ptr)
    assert b2revb_ind == []

    print("KERNEL_OK")
</pallas_src>

<mosaic_0001>
module attributes {stable_mosaic.version = 11 : i64} {
  func.func @_batch_kernel(%arg0: i32, %arg1: memref<8x1xi32, #tpu.memory_space<vmem>>, %arg2: memref<1x128xi32, #tpu.memory_space<vmem>>) attributes {dimension_semantics = [#tpu.dimension_semantics<parallel>], iteration_bounds = array<i64: 1>, scalar_prefetch = 0 : i64, scratch_operands = 0 : i64, tpu.core_type = #tpu.core_type<tc>, window_params = [{pipeline_mode = #tpu.pipeline_mode<synchronous>, transform_indices = @transform_0, window_bounds = array<i64: 8, 1>}, {transform_indices = @transform_1, window_bounds = array<i64: 1, 128>}]} {
    %0 = tpu.iota {dimensions = array<i32: 1>} : vector<1x128xi32>
    %c128_i32 = arith.constant 128 : i32
    %1 = arith.muli %arg0, %c128_i32 : i32
    %2 = vector.broadcast %1 : i32 to vector<1x128xi32>
    %3 = arith.addi %0, %2 : vector<1x128xi32>
    %c0_i32 = arith.constant 0 : i32
    %4 = vector.broadcast %c0_i32 : i32 to vector<1x128xi32>
    %c0_i32_0 = arith.constant 0 : i32
    %5 = tpu.assume_multiple %c0_i32_0, 8 : i32
    %6 = arith.index_cast %5 : i32 to index
    %c0 = arith.constant 0 : index
    %7 = vector.load %arg1[%6, %c0] : memref<8x1xi32, #tpu.memory_space<vmem>>, vector<8x1xi32>
    %8 = vector.broadcast %3 : vector<1x128xi32> to vector<8x128xi32>
    %9 = vector.broadcast %7 : vector<8x1xi32> to vector<8x128xi32>
    %10 = arith.cmpi sge, %8, %9 : vector<8x128xi32>
    %11 = arith.extui %10 : vector<8x128xi1> to vector<8x128xi32>
    %cst = arith.constant dense<0> : vector<128xi32>
    %12 = vector.multi_reduction <add>, %11, %cst [0] : vector<8x128xi32> to vector<128xi32>
    %13 = vector.shape_cast %12 : vector<128xi32> to vector<1x128xi32>
    %14 = arith.addi %4, %13 : vector<1x128xi32>
    %c0_1 = arith.constant 0 : index
    %c0_2 = arith.constant 0 : index
    %15 = vector.load %arg2[%c0_1, %c0_2] : memref<1x128xi32, #tpu.memory_space<vmem>>, vector<1x128xi32>
    tpu.vector_store %arg2[%c0_1, %c0_2], %14 {strides = array<i32>} : memref<1x128xi32, #tpu.memory_space<vmem>>, vector<1x128xi32>,
    return
  }
  func.func @transform_0(%arg0: i32) -> (i32, i32) {
    %c0_i32 = arith.constant 0 : i32
    %c0_i32_0 = arith.constant 0 : i32
    %c0_i32_1 = arith.constant 0 : i32
    return %c0_i32, %c0_i32_0 : i32, i32
  }
  func.func @transform_1(%arg0: i32) -> (i32, i32) {
    %c0_i32 = arith.constant 0 : i32
    %c0_i32_0 = arith.constant 0 : i32
    return %c0_i32, %arg0 : i32, i32
  }
}

</mosaic_0001>

<bundles_post_ra>
// kernel: tpu_custom_call.1
= control target key start
LH: loop header
LB: loop body
LE: loop exit
PB: predicated region body
PF: predicated region fallthrough
CT: control target
= control target key end

     0   :  { %s90_s0 = inlined_call_operand.vmem [shape: s32[8,1], index: 0, kind: input, shape index: {}]   ;;  %s91_s1 = inlined_call_operand.hbm [shape: s32[1,128], index: 1, kind: output, shape index: {}]  }
   0x1   :  { %v14_v0 = vld [vmem:[%s90_s0] sm:$0xff] }
   0x2   :  { %6 = vsyncpa [#allocation3], 0  ;;  %v72_v1 = vmov 0   ;;  %v9_v2 = vlaneseq  ;;  %s73_s8 = smov [#allocation2]   ;;  %s34_s12 = sshll.u32 %s91_s1, 4  ;;  %s35_s12 = int_to_ptr.hbm [resolvable:$true] %s34_s12 }
   0x3   :  { %45 = vset.pattern.permute.xlu0 %v72_v1  ;;  %s32_s9 = sshll.u32 %s73_s8, 4  ;;  %s33_s9 = int_to_ptr.vmem [resolvable:$true] %s32_s9 }
   0x4   :  { %16 = vperm.xlu0 %45, %v14_v0   ;;  %v10_v3 = vand.u32 127, %v9_v2 }
  0x76   :  { %v17_v4 = vpop.permute.xlu0 %16 }
  0x77   :  { %vm18_vm0 = vcmp.ge.s32.totalorder %v10_v3, %v17_v4 }
  0x78   :  { %v19_v5 = vsel %vm18_vm0, 1, %v72_v1 }
  0x79   :  { %v20_v6 = vrot.slane %v19_v5, 4 }
  0x7b   :  { %v21_v7 = vadd.s32 %v20_v6, %v19_v5 }
  0x7d   :  { %v22_v8 = vrot.slane %v21_v7, 2 }
  0x7f   :  { %v23_v9 = vadd.s32 %v22_v8, %v21_v7 }
  0x81   :  { %v24_v10 = vrot.slane %v23_v9, 1 }
  0x83   :  { %v25_v11 = vadd.s32 %v24_v10, %v23_v9 }
  0x85   :  { %26 = vst [vmem:[#allocation2] sm:$0x1] %v25_v11 }
  0x86   :  { %37 = dma.vmem_to_hbm [thread:$0]  %s33_s9, 16, %s35_s12, [#allocation3]  }
  0x87   :  { %70 = dma.done.wait [#allocation3], 16  }
  0x88   :  { %71 = vsyncadd [#allocation3], 4294967280 }
  0x89   :  { %42 = vsyncpa [#allocation3], 1 }

</bundles_post_ra>
